<compile_context>
chip_gen: v5e
topology: v5e:2x2
jax: 0.10.0
libtpu: 0.0.40
codegen_flags: <defaults>
</compile_context>

<pallas_src>
import functools

import jax
import jax.numpy as jnp
from jax.experimental import pallas as pl
from jax.experimental.pallas import tpu as pltpu

_MiB = 1024 * 1024
_VMEM_FLOOR = 32 * _MiB    # override v5e's 16 MiB scoped default
_VMEM_CAP = 48 * _MiB      # leave headroom inside v7x's 64 MiB physical VMEM
_VMEM_BUDGET = 40 * _MiB   # honest per-kernel estimate must stay under this


def _round_up(a, b):
    return -(-a // b) * b


def _sublane(itemsize):
    # sublane packing: 8 rows for 4-byte dtypes, 16 for 2-byte, 32 for 1-byte
    return max(8, 32 // max(int(itemsize), 1))


def _choose_row_tile(rows, need_fn, itemsize, target_tile_bytes, bytes_per_row):
    """Pick a sublane-aligned row-tile size.

    * ~4 MiB input tiles amortize the ~0.35us/step pipeline overhead (matters
      most at v7x's 3.2 TB/s per-TC HBM path, ~8% -> ~4% on v6e, neutral v5e),
    * at least 2 row tiles whenever `rows` allows it, so the "parallel" row
      axis can shard across both TensorCores on v7x and DMA/compute overlap,
    * the honest VMEM need (pipelined I/O + f32 temps) stays under budget.
    """
    sub = _sublane(itemsize)
    if rows <= sub:
        return rows                                  # single full-dim block
    tm = max(sub, (target_tile_bytes // max(bytes_per_row, 1)) // sub * sub)
    half = _round_up(_round_up(rows, 2) // 2, sub)   # ceil(rows/2), sublane-aligned
    tm = min(tm, max(sub, half))                     # force grid >= 2
    while tm > sub and need_fn(tm) > _VMEM_BUDGET:
        tm = max(sub, (tm // 2) // sub * sub)
    return tm


# ----------------------------------------------------------------------------
# Kernel 1: fused residual-add + LayerNorm (used for the attention sublayers).
# ----------------------------------------------------------------------------
def _add_ln_kernel(x_ref, r_ref, gamma_ref, beta_ref, o_ref, *, eps, features):
    # Row-local math only.  The partial last row-block relies on Pallas OOB
    # masking (garbage rows are computed but their stores are dropped); this is
    # safe ONLY because nothing here reduces across rows.
    x = x_ref[...].astype(jnp.float32) + r_ref[...].astype(jnp.float32)
    mean = jnp.mean(x, axis=-1, keepdims=True)
    diff = x - mean
    # torch.std uses Bessel's correction (N-1); eps is added to std (not var).
    var = jnp.sum(diff * diff, axis=-1, keepdims=True) * jnp.float32(
        1.0 / (features - 1))
    inv = pl.reciprocal(jnp.sqrt(var) + jnp.float32(eps), approx=False)
    y = (diff * inv * gamma_ref[...].astype(jnp.float32)
         + beta_ref[...].astype(jnp.float32))
    o_ref[...] = y.astype(o_ref.dtype)


def add_layer_norm(x, y, a_2, b_2, eps=1e-6, *, target_tile_bytes=4 * _MiB):
    """Computes LayerNorm(x + y) over the last axis (torch-style LN)."""
    assert x.shape == y.shape, "residual and sublayer output must match"
    orig_shape = x.shape
    features = orig_shape[-1]
    assert a_2.shape == (features,) and b_2.shape == (features,)

    x2 = x.reshape(-1, features)
    y2 = y.reshape(-1, features)
    rows = x2.shape[0]
    itemsize = jnp.dtype(x.dtype).itemsize
    bytes_per_row = features * itemsize

    def vmem_need(tm):
        tile = tm * bytes_per_row
        f32_tmp = 3 * tm * features * 4   # x+r, diff, y live as f32 VMEM temps
        return 6 * tile + f32_tmp + 2 * features * 4

    tm = _choose_row_tile(rows, vmem_need, itemsize, target_tile_bytes,
                          bytes_per_row)
    grid = pl.cdiv(rows, tm)
    vmem_limit = int(min(_VMEM_CAP, max(_VMEM_FLOOR, vmem_need(tm) + 4 * _MiB)))

    gamma = a_2.reshape(1, features)
    beta = b_2.reshape(1, features)
    kernel = functools.partial(_add_ln_kernel, eps=eps, features=features)

    out2 = pl.pallas_call(
        kernel,
        out_shape=jax.ShapeDtypeStruct((rows, features), x.dtype),
        grid_spec=pltpu.PrefetchScalarGridSpec(
            num_scalar_prefetch=0,
            grid=(grid,),
            in_specs=[
                pl.BlockSpec((tm, features), lambda i: (i, 0)),
                pl.BlockSpec((tm, features), lambda i: (i, 0)),
                pl.BlockSpec((1, features), lambda i: (0, 0)),
                pl.BlockSpec((1, features), lambda i: (0, 0)),
            ],
            out_specs=pl.BlockSpec((tm, features), lambda i: (i, 0)),
        ),
        compiler_params=pltpu.CompilerParams(
            dimension_semantics=("parallel",),   # shards rows across TCs (v7x)
            vmem_limit_bytes=vmem_limit,
        ),
    )(x2, y2, gamma, beta)
    return out2.reshape(orig_shape)


# ----------------------------------------------------------------------------
# Kernel 2: fully fused FFN + residual-add + LayerNorm epilogue.
#   out = LN(x + relu(x @ W1) @ W2)
# The FFN output tile is produced and consumed in VMEM (never hits HBM).
# ----------------------------------------------------------------------------
def _ffn_add_ln_kernel(x_ref, w1_ref, w2_ref, gamma_ref, beta_ref, o_ref,
                       acc_ref, *, eps, features):
    h = pl.program_id(1)

    @pl.when(h == 0)
    def _():
        acc_ref[...] = jnp.zeros_like(acc_ref)

    # relu(x @ W1[:, h-slice]) @ W2[h-slice, :] — ReLU is elementwise over the
    # hidden axis, so accumulating per hidden slice is exact.
    a = jnp.dot(x_ref[...], w1_ref[...], preferred_element_type=jnp.float32)
    a = jnp.maximum(a, 0.0)
    acc_ref[...] += jnp.dot(a.astype(w2_ref.dtype), w2_ref[...],
                            preferred_element_type=jnp.float32)

    @pl.when(h == pl.num_programs(1) - 1)
    def _():
        # Epilogue: residual add + LayerNorm on the tile already in VMEM.
        xf = x_ref[...].astype(jnp.float32) + acc_ref[...]
        mean = jnp.mean(xf, axis=-1, keepdims=True)
        diff = xf - mean
        var = jnp.sum(diff * diff, axis=-1, keepdims=True) * jnp.float32(
            1.0 / (features - 1))
        inv = pl.reciprocal(jnp.sqrt(var) + jnp.float32(eps), approx=False)
        y = (diff * inv * gamma_ref[...].astype(jnp.float32)
             + beta_ref[...].astype(jnp.float32))
        o_ref[...] = y.astype(o_ref.dtype)


def ffn_add_layer_norm(x, w1, w2, a_2, b_2, eps=1e-6, *,
                       target_tile_bytes=4 * _MiB):
    """out = LayerNorm(x + relu(x @ w1) @ w2), fully fused in one Pallas call."""
    orig_shape = x.shape
    features = orig_shape[-1]
    hidden = w1.shape[-1]
    assert w1.shape == (features, hidden) and w2.shape == (hidden, features)
    assert a_2.shape == (features,) and b_2.shape == (features,)

    x2 = x.reshape(-1, features)
    rows = x2.shape[0]
    itemsize = jnp.dtype(x.dtype).itemsize
    w_itemsize = jnp.dtype(w1.dtype).itemsize
    bytes_per_row = features * itemsize

    # Hidden-dim tile: full if small or not 128-aligned, else a multiple of 128
    # sized so the (F,th) + (th,F) weight slices stay modest in VMEM.
    if hidden <= 512 or hidden % 128 != 0:
        th = hidden
    else:
        per_col = 2 * features * w_itemsize
        th = max(128, ((2 * _MiB) // max(per_col, 1)) // 128 * 128)
        th = min(th, hidden)

    def vmem_need(tm):
        x_tiles = 2 * tm * bytes_per_row                       # double-buffered
        w_tiles = 2 * (features * th + th * features) * w_itemsize
        out_tiles = 2 * tm * features * itemsize
        acc = tm * features * 4
        f32_tmp = tm * th * 4 + 3 * tm * features * 4
        return x_tiles + w_tiles + out_tiles + acc + f32_tmp + 2 * features * 4

    tm = _choose_row_tile(rows, vmem_need, itemsize, target_tile_bytes,
                          bytes_per_row)
    grid = (pl.cdiv(rows, tm), pl.cdiv(hidden, th))
    vmem_limit = int(min(_VMEM_CAP, max(_VMEM_FLOOR, vmem_need(tm) + 4 * _MiB)))

    gamma = a_2.reshape(1, features)
    beta = b_2.reshape(1, features)
    kernel = functools.partial(_ffn_add_ln_kernel, eps=eps, features=features)

    out2 = pl.pallas_call(
        kernel,
        out_shape=jax.ShapeDtypeStruct((rows, features), x.dtype),
        grid_spec=pltpu.PrefetchScalarGridSpec(
            num_scalar_prefetch=0,
            grid=grid,
            in_specs=[
                pl.BlockSpec((tm, features), lambda i, h: (i, 0)),
                pl.BlockSpec((features, th), lambda i, h: (0, h)),
                pl.BlockSpec((th, features), lambda i, h: (h, 0)),
                pl.BlockSpec((1, features), lambda i, h: (0, 0)),
                pl.BlockSpec((1, features), lambda i, h: (0, 0)),
            ],
            out_specs=pl.BlockSpec((tm, features), lambda i, h: (i, 0)),
            scratch_shapes=[pltpu.VMEM((tm, features), jnp.float32)],
        ),
        compiler_params=pltpu.CompilerParams(
            # rows parallel (megacore on v7x); hidden is the reduction axis.
            dimension_semantics=("parallel", "arbitrary"),
            vmem_limit_bytes=vmem_limit,
        ),
    )(x2, w1, w2, gamma, beta)
    return out2.reshape(orig_shape)


# ----------------------------------------------------------------------------
# The TransformerBlock forward pass.
# ----------------------------------------------------------------------------
def transformer_block(x, x_mask, m, m_mask, norm_params, *,
                      self_attn=None, cross_attn=None,
                      ffn_weights=None, feed_forward=None,
                      dropout_rate=0.0, eps=1e-6):
    """Forward pass of the PyTorch TransformerBlock.

    self_attn / cross_attn are constructor-injected modules in the PyTorch
    spec; here they are arbitrary JAX callables, and their residual connection
    LN(x + dropout(sub(x))) uses the fused Pallas add+LN kernel.  The FFN
    residual uses the fully fused Pallas FFN+add+LN kernel when the standard
    two-matrix MLP weights are given via ffn_weights=(w1, w2); otherwise it
    falls back to an arbitrary feed_forward callable + the add+LN kernel.
    """
    # nn.Dropout is identity in eval mode.
    # TODO(synk): training-mode dropout (PRNG Bernoulli mask before the add).
    del dropout_rate
    (a0, b0), (a1, b1), (a2, b2) = norm_params
    if self_attn is not None:
        x = add_layer_norm(x, self_attn(x, x, x, x_mask), a0, b0, eps)
    if cross_attn is not None:
        x = add_layer_norm(x, cross_attn(x, m, m, m_mask), a1, b1, eps)
    if ffn_weights is not None:
        w1, w2 = ffn_weights
        x = ffn_add_layer_norm(x, w1, w2, a2, b2, eps)
    else:
        x = add_layer_norm(x, feed_forward(x), a2, b2, eps)
    return x


if __name__ == "__main__":
    batch, seq, mseq, hidden = 2, 8, 8, 32
    d_ff = 4 * hidden
    key = jax.random.PRNGKey(0)
    kx, km, kw1, kw2 = jax.random.split(key, 4)
    x = jax.random.normal(kx, (batch, seq, hidden), dtype=jnp.float32)
    m = jax.random.normal(km, (batch, mseq, hidden), dtype=jnp.float32)

    # LayerNorm params matching nn.Parameter(torch.ones/zeros(features)), x3.
    a0 = jnp.ones((hidden,), jnp.float32); b0 = jnp.zeros((hidden,), jnp.float32)
    a1 = jnp.ones((hidden,), jnp.float32); b1 = jnp.zeros((hidden,), jnp.float32)
    a2 = jnp.ones((hidden,), jnp.float32); b2 = jnp.zeros((hidden,), jnp.float32)

    # Example attention sublayers (the PyTorch block receives these injected).
    def sdpa(q, k, v, mask):
        d = q.shape[-1]
        scores = jnp.einsum("bqd,bkd->bqk", q, k) / jnp.sqrt(jnp.float32(d))
        if mask is not None:
            scores = jnp.where(mask, scores, jnp.float32(-1e9))
        w = jax.nn.softmax(scores, axis=-1)
        return jnp.einsum("bqk,bkd->bqd", w, v)

    w1 = jax.random.normal(kw1, (hidden, d_ff), jnp.float32) * 0.1
    w2 = jax.random.normal(kw2, (d_ff, hidden), jnp.float32) * 0.1

    out = transformer_block(
        x, None, m, None,
        norm_params=((a0, b0), (a1, b1), (a2, b2)),
        self_attn=sdpa, cross_attn=sdpa, ffn_weights=(w1, w2), eps=1e-6,
    )
    out = jax.block_until_ready(out)

    # Pure-JAX reference (unbiased std, eps on std — matches torch).
    def ln_ref(t, g, bt, eps=1e-6):
        mean = t.mean(-1, keepdims=True)
        var = jnp.sum((t - mean) ** 2, -1, keepdims=True) / (t.shape[-1] - 1)
        return g * (t - mean) / (jnp.sqrt(var) + eps) + bt

    # 1) Tight check of the add+LN kernel alone (no matmul inside).
    y_probe = jax.random.normal(jax.random.PRNGKey(1), x.shape, jnp.float32)
    ln_out = jax.block_until_ready(add_layer_norm(x, y_probe, a0, b0))
    assert jnp.allclose(ln_out, ln_ref(x + y_probe, a0, b0),
                        atol=1e-5, rtol=1e-5), "add+LN kernel mismatch"

    # 2) Full-block check.  Looser tolerance: the fused FFN runs its matmuls on
    #    the MXU inside Pallas, whose f32 emulation precision may differ
    #    slightly from the XLA einsum used in this reference.
    ref = x
    ref = ln_ref(ref + sdpa(ref, ref, ref, None), a0, b0)
    ref = ln_ref(ref + sdpa(ref, m, m, None), a1, b1)
    ref = ln_ref(ref + jnp.maximum(ref @ w1, 0.0) @ w2, a2, b2)
    assert jnp.allclose(out, ref, atol=1e-2, rtol=1e-2), "block mismatch"

    print("KERNEL_OK")
</pallas_src>

<mosaic_0001>
module attributes {stable_mosaic.version = 11 : i64} {
  func.func @_add_ln_kernel(%arg0: i32, %arg1: memref<8x32xf32, #tpu.memory_space<vmem>>, %arg2: memref<8x32xf32, #tpu.memory_space<vmem>>, %arg3: memref<1x32xf32, #tpu.memory_space<vmem>>, %arg4: memref<1x32xf32, #tpu.memory_space<vmem>>, %arg5: memref<8x32xf32, #tpu.memory_space<vmem>>) attributes {dimension_semantics = [#tpu.dimension_semantics<parallel>], iteration_bounds = array<i64: 2>, scalar_prefetch = 0 : i64, scratch_operands = 0 : i64, tpu.core_type = #tpu.core_type<tc>, window_params = [{transform_indices = @transform_0, window_bounds = array<i64: 8, 32>}, {transform_indices = @transform_1, window_bounds = array<i64: 8, 32>}, {pipeline_mode = #tpu.pipeline_mode<synchronous>, transform_indices = @transform_2, window_bounds = array<i64: 1, 32>}, {pipeline_mode = #tpu.pipeline_mode<synchronous>, transform_indices = @transform_3, window_bounds = array<i64: 1, 32>}, {transform_indices = @transform_4, window_bounds = array<i64: 8, 32>}]} {
    %c0 = arith.constant 0 : index
    %c0_0 = arith.constant 0 : index
    %0 = vector.load %arg1[%c0, %c0_0] : memref<8x32xf32, #tpu.memory_space<vmem>>, vector<8x32xf32>
    %c0_1 = arith.constant 0 : index
    %c0_2 = arith.constant 0 : index
    %1 = vector.load %arg2[%c0_1, %c0_2] : memref<8x32xf32, #tpu.memory_space<vmem>>, vector<8x32xf32>
    %2 = arith.addf %0, %1 : vector<8x32xf32>
    %cst = arith.constant dense<0.000000e+00> : vector<8xf32>
    %3 = vector.multi_reduction <add>, %2, %cst [1] : vector<8x32xf32> to vector<8xf32>
    %4 = vector.shape_cast %3 : vector<8xf32> to vector<8x1xf32>
    %cst_3 = arith.constant 3.200000e+01 : f32
    %5 = vector.broadcast %cst_3 : f32 to vector<8x1xf32>
    %6 = arith.divf %4, %5 : vector<8x1xf32>
    %7 = vector.broadcast %6 : vector<8x1xf32> to vector<8x32xf32>
    %8 = arith.subf %2, %7 : vector<8x32xf32>
    %9 = arith.mulf %8, %8 : vector<8x32xf32>
    %cst_4 = arith.constant dense<0.000000e+00> : vector<8xf32>
    %10 = vector.multi_reduction <add>, %9, %cst_4 [1] : vector<8x32xf32> to vector<8xf32>
    %11 = vector.shape_cast %10 : vector<8xf32> to vector<8x1xf32>
    %cst_5 = arith.constant 0.0322580636 : f32
    %12 = vector.broadcast %cst_5 : f32 to vector<8x1xf32>
    %13 = arith.mulf %11, %12 : vector<8x1xf32>
    %14 = math.sqrt %13 : vector<8x1xf32>
    %cst_6 = arith.constant 9.99999997E-7 : f32
    %15 = vector.broadcast %cst_6 : f32 to vector<8x1xf32>
    %16 = arith.addf %14, %15 : vector<8x1xf32>
    %17 = tpu.reciprocal %16 : vector<8x1xf32> -> vector<8x1xf32>
    %18 = vector.broadcast %17 : vector<8x1xf32> to vector<8x32xf32>
    %19 = arith.mulf %8, %18 : vector<8x32xf32>
    %c0_7 = arith.constant 0 : index
    %c0_8 = arith.constant 0 : index
    %20 = vector.load %arg3[%c0_7, %c0_8] : memref<1x32xf32, #tpu.memory_space<vmem>>, vector<1x32xf32>
    %21 = vector.broadcast %20 : vector<1x32xf32> to vector<8x32xf32>
    %22 = arith.mulf %19, %21 : vector<8x32xf32>
    %c0_9 = arith.constant 0 : index
    %c0_10 = arith.constant 0 : index
    %23 = vector.load %arg4[%c0_9, %c0_10] : memref<1x32xf32, #tpu.memory_space<vmem>>, vector<1x32xf32>
    %24 = vector.broadcast %23 : vector<1x32xf32> to vector<8x32xf32>
    %25 = arith.addf %22, %24 : vector<8x32xf32>
    %c0_11 = arith.constant 0 : index
    %c0_12 = arith.constant 0 : index
    %26 = vector.load %arg5[%c0_11, %c0_12] : memref<8x32xf32, #tpu.memory_space<vmem>>, vector<8x32xf32>
    tpu.vector_store %arg5[%c0_11, %c0_12], %25 {strides = array<i32>} : memref<8x32xf32, #tpu.memory_space<vmem>>, vector<8x32xf32>,
    return
  }
  func.func @transform_0(%arg0: i32) -> (i32, i32) {
    %c0_i32 = arith.constant 0 : i32
    %c0_i32_0 = arith.constant 0 : i32
    return %arg0, %c0_i32 : i32, i32
  }
  func.func @transform_1(%arg0: i32) -> (i32, i32) {
    %c0_i32 = arith.constant 0 : i32
    %c0_i32_0 = arith.constant 0 : i32
    return %arg0, %c0_i32 : i32, i32
  }
  func.func @transform_2(%arg0: i32) -> (i32, i32) {
    %c0_i32 = arith.constant 0 : i32
    %c0_i32_0 = arith.constant 0 : i32
    %c0_i32_1 = arith.constant 0 : i32
    return %c0_i32, %c0_i32_0 : i32, i32
  }
  func.func @transform_3(%arg0: i32) -> (i32, i32) {
    %c0_i32 = arith.constant 0 : i32
    %c0_i32_0 = arith.constant 0 : i32
    %c0_i32_1 = arith.constant 0 : i32
    return %c0_i32, %c0_i32_0 : i32, i32
  }
  func.func @transform_4(%arg0: i32) -> (i32, i32) {
    %c0_i32 = arith.constant 0 : i32
    %c0_i32_0 = arith.constant 0 : i32
    return %arg0, %c0_i32 : i32, i32
  }
}

</mosaic_0001>

<bundles_post_ra>
// kernel: tpu_custom_call.1
= control target key start
LH: loop header
LB: loop body
LE: loop exit
PB: predicated region body
PF: predicated region fallthrough
CT: control target
= control target key end

     0   :  { %s830_s0 = inlined_call_operand.hbm [shape: f32[16,32], index: 0, kind: input, shape index: {}]   ;;  %s831_s1 = inlined_call_operand.hbm [shape: f32[16,32], index: 1, kind: input, shape index: {}]   ;;  %s832_s2 = inlined_call_operand.vmem [shape: f32[1,32], index: 2, kind: input, shape index: {}]   ;;  %s833_s3 = inlined_call_operand.vmem [shape: f32[1,32], index: 3, kind: input, shape index: {}]   ;;  %s834_s4 = inlined_call_operand.hbm [shape: f32[16,32], index: 4, kind: output, shape index: {}]  }
   0x1   :  { %835 = sst [smem:[#allocation11_spill]] %s830_s0 }
   0x2   :  { %9 = vsyncpa [#allocation3], 0 }
   0x3   :  { %11 = vsyncpa [#allocation3 + $0x1], 0 }
   0x4   :  { %12 = vsyncpa [#allocation6], 0 }
   0x5   :  { %14 = vsyncpa [#allocation6 + $0x1], 0 }
   0x6   :  { %15 = vsyncpa [#allocation4], 0 }
   0x7   :  { %17 = vsyncpa [#allocation4 + $0x1], 0  ;;  %s656_s15 = smov 0   ;;  %s658_s16 = smov 0  }
   0x8   :  { %s660_s17 = smov 0   ;;  %s662_s18 = smov 0  }
   0x9 LB: > { %s677_s19 = sadd.s32 4294967295, %s628_s18   ;;  %s423_s20 = sadd.s32 4294967294, %s628_s18   ;;  %s628_s18 = sphi %s662_s18, %s847_s18   ;;  %s624_s17 = sphi %s660_s17, %s846_s17   ;;  %s620_s16 = sphi %s658_s16, %s845_s16   ;;  %s616_s15 = sphi %s656_s15, %s844_s15  }
   0xa   : > { %s681_s21 = sadd.s32 1, %s628_s18   ;;  %s30_s22 = sadd.s32 1, %s624_s17 }
   0xb   : > { %s27_s23 = ssub.s32 %s628_s18, %s681_s21  ;;  %p37_p0 = scmp.ne.s32.totalorder %s624_s17, %s620_s16 }
   0xc   : > { %p28_p1 = scmp.eq.s32.totalorder %s27_s23, 0  ;;  %p38_p2 = scmp.eq.s32.totalorder %s628_s18, 0 }
   0xd   : > { %p43_p3 = scmp.ne.s32.totalorder %s620_s16, %s616_s15  ;;  %p44_p4 = scmp.eq.s32.totalorder %s677_s19, 0 }
   0xe   : > { %s693_s24 = scalar_select %p28_p1, %s624_s17, %s30_s22  }
   0xf   : > { %p695_p5 = por %p38_p2, %p37_p0  ;;  %p699_p6 = por %p44_p4, %p43_p3 }
  0x10   : > { %p135_p7 = scmp.eq.s32.totalorder %s677_s19, 1  ;;  %p141_p8 = scmp.eq.s32.totalorder %s423_s20, 1 }
  0x11   : > { %p455_p10 = scmp.lt.s32.totalorder %s628_s18, 2  ;;  %s715_s29 = sand.u32 1, %s624_s17  }
  0x12   : > { %p706_p11 = por %p135_p7, %p37_p0  ;;  %p710_p12 = por %p141_p8, %p43_p3 }
  0x13   : > { %s427_s30 = sshll.u32 %s628_s18, 3  ;;  %s426_s5 = sshll.u32 %s715_s29, 3 }
  0x14   : > { %s840_s0 = sld [smem:[#allocation11_spill]]  ;;  %s171_s10 = scalar_lea.vmem [#allocation2], %s426_s5 }
  0x15   : > { %s179_s11 = sshll.u32 %s171_s10, 4  ;;  %p724_p13 = pnand %p455_p10, %p695_p5  ;;  %s180_s11 = int_to_ptr.vmem [resolvable:$true] %s179_s11 }
  0x16   : > { %p430_p0 = scmp.ge.s32.totalorder %s628_s18, 1  ;;  %p203_p1 = scmp.lt.s32.totalorder %s628_s18, 3 }
  0x17   : > { %s168_s13 = scalar_lea.sflag [#allocation3], %s715_s29  ;;  %p502_p3 = pneg %p724_p13 }
  0x1a   : > { %s175_s8 = scalar_lea.hbm %s840_s0, %s427_s30  ;;  %s505_s25 = scalar_lea.hbm %s840_s0, 16 }
  0x1b   : > { %s177_s9 = sshll.u32 %s175_s8, 4  ;;  %s178_s9 = int_to_ptr.hbm [resolvable:$true] %s177_s9 }
  0x1c   : > { %s498_s14 = sshra.s32 %s178_s9, 4  ;;  %s499_s14 = int_to_ptr.hbm [resolvable:$true] %s498_s14 }
  0x1d   : > { %s500_s20 = scalar_lea.hbm %s499_s14, 8  ;;  %p506_p5 = scmp.lt.s32.totalorder %s499_s14, %s840_s0 }
  0x1e   : > { %p501_p2 = scmp.ne.s32.totalorder %s499_s14, %s500_s20  ;;  %p507_p8 = scmp.lt.s32.totalorder %s505_s25, %s500_s20 }
  0x20   : > { %p503_p4 = pnand %p502_p3, %p501_p2  ;;  %p508_p10 = por %p507_p8, %p506_p5 }
  0x22   : > { %p504_p7 = pneg %p503_p4 }
  0x24   : > { %p509_p9 = pnand %p508_p10, %p504_p7 }
  0x26   : > { %512 = shalt.err (!%p509_p9)
}
  0x27   : > { %447 = dma.hbm_to_vmem [thread:$0]  (!%p724_p13), %s178_s9, 128, %s180_s11, %s168_s13  }
  0x28   : > { %p748_p2 = pnand %p430_p0, %p203_p1  ;;  %s194_s14 = scalar_lea.hbm %s831_s1, %s427_s30 }
  0x29   : > { %s196_s20 = sshll.u32 %s194_s14, 4  ;;  %s190_s23 = scalar_lea.vmem [#allocation5], %s426_s5  ;;  %s197_s20 = int_to_ptr.hbm [resolvable:$true] %s196_s20 }
  0x2a   : > { %s198_s25 = sshll.u32 %s190_s23, 4  ;;  %s187_s6 = scalar_lea.sflag [#allocation6], %s715_s29  ;;  %s199_s25 = int_to_ptr.vmem [resolvable:$true] %s198_s25 }
  0x2b   : > { %s528_s7 = sshra.s32 %s197_s20, 4  ;;  %s535_s13 = scalar_lea.hbm %s831_s1, 16  ;;  %s529_s7 = int_to_ptr.hbm [resolvable:$true] %s528_s7 }
  0x2c   : > { %s530_s0 = scalar_lea.hbm %s529_s7, 8  ;;  %p536_p4 = scmp.lt.s32.totalorder %s529_s7, %s831_s1 }
  0x2d   : > { %p531_p9 = scmp.ne.s32.totalorder %s529_s7, %s530_s0  ;;  %p537_p7 = scmp.lt.s32.totalorder %s535_s13, %s530_s0 }
  0x2f   : > { %p533_p0 = pnand %p531_p9, %p502_p3  ;;  %p538_p5 = por %p537_p7, %p536_p4 }
  0x31   : > { %p534_p1 = pneg %p533_p0 }
  0x33   : > { %p539_p8 = pnand %p538_p5, %p534_p1 }
  0x35   : > { %542 = shalt.err (!%p539_p8)
}
  0x36   : > { %450 = dma.hbm_to_vmem [thread:$0]  (!%p724_p13), %s197_s20, 128, %s199_s25, %s187_s6  }
  0x37   : > { %207 = sbr.rel (%p748_p2) target bundleno = 357 (0x165), region = 36  ;;  %s770_s29 = sand.u32 (!%p748_p2), 1, %s620_s16  }
  0x38   : > { %s773_s5 = sshll.u32 (!%p748_p2), %s770_s29, 3  ;;  %s210_s22 = scalar_lea.sflag (!%p748_p2), [#allocation3], %s770_s29 }
  0x39   : > { %s213_s0 = scalar_lea.vmem (!%p748_p2), [#allocation2], %s773_s5 }
  0x3c   : > { %603 = dma.done.wait (%p699_p6), %s210_s22, 128  }
  0x3d   : > { %605 = vsyncadd (%p699_p6), %s210_s22, 4294967168  ;;  %s220_s12 = scalar_lea.sflag [#allocation6], %s770_s29  ;;  %s223_s8 = scalar_lea.vmem [#allocation5], %s773_s5 }
  0x3e   : > { %607 = dma.done.wait (%p699_p6), %s220_s12, 128  }
  0x3f   : > { %609 = vsyncadd (%p699_p6), %s220_s12, 4294967168  ;;  %v254_v0 = vld [vmem:[%s213_s0] sm:$0xff]  ;;  %v255_v1 = vld [vmem:[%s223_s8] sm:$0xff]  ;;  %vm257_vm0 = vcmask 261120   ;;  %v630_v4 = vmov 32.0   ;;  %s435_s26 = sshll.u32 %s677_s19, 3 }
  0x40   : > { %v256_v2 = vadd.f32 %v255_v1, %v254_v0  ;;  %492 = vrcp.f32 %v630_v4  ;;  %v490_v38 = vld [vmem:[%s832_s2] ss:$0 sm:$0xff]  ;;  %s325_s6 = scalar_lea.hbm %s834_s4, %s435_s26  ;;  %s253_s9 = scalar_lea.vmem [#allocation7], %s773_s5 }
  0x41   : > { %v491_v41 = vld [vmem:[%s833_s3] ss:$0 sm:$0xff]  ;;  %s327_s11 = sshll.u32 %s253_s9, 4  ;;  %s329_s13 = sshll.u32 %s325_s6, 4  ;;  %s328_s11 = int_to_ptr.vmem [resolvable:$true] %s327_s11  ;;  %s330_s13 = int_to_ptr.hbm [resolvable:$true] %s329_s13 }
  0x42   : > { %v258_v3 = vsel %vm257_vm0, %v256_v2, 0.0  ;;  %s315_s10 = scalar_lea.sflag [#allocation4], %s770_s29  ;;  %s572_s30 = sshra.s32 %s330_s13, 4  ;;  %s573_s30 = int_to_ptr.hbm [resolvable:$true] %s572_s30 }
  0x43   : > { %259 = vadd.xlane.f32.xlu0 %v258_v3  ;;  %s574_s22 = scalar_lea.hbm %s573_s30, 8  ;;  %s578_s5 = scalar_lea.hbm %s834_s4, 16 }
  0x44   : > { %p575_p6 = scmp.ne.s32.totalorder %s573_s30, %s574_s22  ;;  %p579_p10 = scmp.lt.s32.totalorder %s573_s30, %s834_s4 }
  0x45   : > { %p580_p2 = scmp.lt.s32.totalorder %s578_s5, %s574_s22 }
  0x46   : > { %v493_v5 = vpop.eup %492  ;;  %p576_p13 = pnand %p575_p6, %p706_p11 }
  0x47   : > { %v262_v6 = vmul.f32 32.0, %v493_v5  ;;  %vm266_vm1 = vweird.f32 %v493_v5  ;;  %p581_p9 = por %p580_p2, %p579_p10 }
  0x48   : > { %p577_p3 = pneg %p576_p13 }
  0x49   : > { %v263_v7 = vsub.f32 1.0, %v262_v6 }
  0x4a   : > { %p582_p0 = pnand %p581_p9, %p577_p3 }
  0x4b   : > { %v264_v8 = vmul.f32 %v493_v5, %v263_v7 }
  0x4d   : > { %v265_v9 = vadd.f32 %v493_v5, %v264_v8 }
  0x4f   : > { %v267_v10 = vsel %vm266_vm1, %v493_v5, %v265_v9 }
  0xb6   : > { %v260_v11 = vpop.xlane.xlu0 %259 }
  0xb7   : > { %v268_v12 = vmul.f32 %v267_v10, %v260_v11 }
  0xb9   : > { %v269_v13 = vsub.f32 %v256_v2, %v268_v12 }
  0xbb   : > { %v270_v14 = vmul.f32 %v269_v13, %v269_v13 }
  0xbd   : > { %v271_v15 = vsel %vm257_vm0, %v270_v14, 0.0 }
  0xbe   : > { %272 = vadd.xlane.f32.xlu0 %v271_v15 }
 0x131   : > { %v273_v16 = vpop.xlane.xlu0 %272 }
 0x132   : > { %v274_v17 = vmul.f32 0.032258064, %v273_v16 }
 0x134   : > { %494 = vrsqrt.f32 %v274_v17  ;;  %vm282_vm2 = vcmp.eq.f32.partialorder %v274_v17, inf  ;;  %v285_v25 = vand.u32 2147483648, %v274_v17  ;;  %vm284_vm3 = vcmp.eq.f32.partialorder %v274_v17, 0.0 }
 0x13a   : > { %v495_v18 = vpop.eup %494 }
 0x13b   : > { %v276_v19 = vmul.f32 %v495_v18, %v274_v17 }
 0x13d   : > { %v277_v20 = vmul.f32 %v495_v18, %v276_v19 }
 0x13f   : > { %v278_v21 = vmul.f32 0.5, %v277_v20 }
 0x141   : > { %v279_v22 = vsub.f32 1.5, %v278_v21 }
 0x143   : > { %v280_v23 = vmul.f32 %v495_v18, %v279_v22 }
 0x145   : > { %v281_v24 = vmul.f32 %v280_v23, %v274_v17 }
 0x147   : > { %v283_v26 = vsel %vm282_vm2, %v274_v17, %v281_v24 }
 0x148   : > { %v286_v27 = vsel %vm284_vm3, %v285_v25, %v283_v26 }
 0x149   : > { %v287_v28 = vadd.f32 1e-06, %v286_v27 }
 0x14b   : > { %496 = vrcp.f32 %v287_v28  ;;  %v299_v32 = vand.u32 2147483648, %v287_v28  ;;  %v297_v34 = vand.u32 2147483647, %v287_v28  ;;  %vm293_vm5 = vweird.f32 %v287_v28 }
 0x14d   : > { %v300_v36 = vor.u32 1.1754944e-38, %v299_v32  ;;  %vm298_vm7 = vcmp.eq.f32.partialorder %v297_v34, 8.507059e+37 }
 0x151   : > { %v497_v29 = vpop.eup %496 }
 0x152   : > { %v289_v30 = vmul.f32 %v497_v29, %v287_v28  ;;  %vm294_vm4 = vweird.f32 %v497_v29 }
 0x153   : > { %vm295_vm6 = vmor %vm293_vm5, %vm294_vm4 }
 0x154   : > { %v290_v31 = vsub.f32 1.0, %v289_v30 }
 0x156   : > { %v291_v33 = vmul.f32 %v497_v29, %v290_v31 }
 0x158   : > { %v292_v35 = vadd.f32 %v497_v29, %v291_v33 }
 0x15a   : > { %v296_v37 = vsel %vm295_vm6, %v497_v29, %v292_v35 }
 0x15b   : > { %v301_v39 = vsel %vm298_vm7, %v300_v36, %v296_v37 }
 0x15c   : > { %v302_v40 = vmul.f32 %v301_v39, %v269_v13 }
 0x15e   : > { %v307_v42 = vmul.f32 %v490_v38, %v302_v40 }
 0x160   : > { %v312_v43 = vadd.f32 %v491_v41, %v307_v42 }
 0x162   : > { %313 = vst.msk [vmem:[%s253_s9] sm:$0xff] %vm257_vm0, %v312_v43 }
 0x163   : > { %585 = shalt.err (!%p582_p0)
}
 0x164   : > { %442 = dma.vmem_to_hbm [thread:$0]  (%p706_p11), %s328_s11, 128, %s330_s13, %s315_s10  }
 0x165 PF: > { %s341_s29 = sand.u32 1, %s616_s15   ;;  %p843_p1 = scmp.ge.s32.totalorder %s628_s18, 2 }
 0x166   : > { %s342_s14 = scalar_lea.sflag [#allocation4], %s341_s29 }
 0x167   : > { %p452_p4 = pnand %p843_p1, %p710_p12 }
 0x169   : > { %p453_p7 = pneg %p452_p4 }
 0x16b   : > { %611 = dma.done.wait (%p453_p7), %s342_s14, 128  }
 0x16c   : > { %613 = vsyncadd (%p453_p7), %s342_s14, 4294967168  ;;  %p20_p5 = scmp.ge.s32.totalorder %s681_s21, 4   ;;  %s844_s15 = smov %s620_s16 }
 0x16d   : > { %s845_s16 = smov %s624_s17  ;;  %s846_s17 = smov %s693_s24 }
 0x16e   : > { %s847_s18 = smov %s681_s21  ;;  %22 = sbr.rel (!%p20_p5) target bundleno = 9 (0x9), region = 94 }
 0x173   :  { %348 = vsyncpa [#allocation3], 1 }
 0x174   :  { %350 = vsyncpa [#allocation3 + $0x1], 1 }
 0x175   :  { %351 = vsyncpa [#allocation6], 1 }
 0x176   :  { %353 = vsyncpa [#allocation6 + $0x1], 1 }
 0x177   :  { %354 = vsyncpa [#allocation4], 1 }
 0x178   :  { %356 = vsyncpa [#allocation4 + $0x1], 1 }

</bundles_post_ra>
